<compile_context>
chip_gen: v7x
topology: tpu7x:2x2x1
jax: 0.10.0
libtpu: 0.0.40
codegen_flags: <defaults>
</compile_context>

<pallas_src>
import math
from functools import partial

import jax
import jax.numpy as jnp
from jax.experimental import pallas as pl
from jax.experimental.pallas import tpu as pltpu

# ---- Config (mirrors the PyTorch module's __init__ fields) ----
BATCH = 2
SEQ = 16
NUM_HEADS = 4
HEAD_DIM = 32
BLOCK_SIZE = 4                            # nsa_block_size
CBS = 4                                   # nsa_compressed_block_size
STRIDE = 2                                # nsa_stride (overlapping blocks)
COMP_HIDDEN = 128                         # nsa_compression_hidden_size
NUM_BLOCKS = max(1, (SEQ - BLOCK_SIZE) // STRIDE + 1)   # 7

IN_FEATS = BLOCK_SIZE * HEAD_DIM          # 128 (lane-dense matmul K)
OUT_FEATS = CBS * HEAD_DIM                # 128 (lane-dense output features)

# ---- Exact-form GELU (PyTorch nn.GELU() default) via Abramowitz-Stegun erf ----
_ERF_P = 0.3275911
_ERF_A1 = 0.254829592
_ERF_A2 = -0.284496736
_ERF_A3 = 1.421413741
_ERF_A4 = -1.453152027
_ERF_A5 = 1.061405429
_INV_SQRT2 = 1.0 / math.sqrt(2.0)


def _gelu_exact(x):
    # GELU(x) = x * 0.5 * (1 + erf(x / sqrt(2)));  erf via A&S 7.1.26, |err| <= 1.5e-7.
    z = jnp.abs(x) * _INV_SQRT2
    t = 1.0 / (1.0 + _ERF_P * z)
    poly = ((((_ERF_A5 * t + _ERF_A4) * t + _ERF_A3) * t + _ERF_A2) * t + _ERF_A1) * t
    erf_abs = 1.0 - poly * jnp.exp(-(z * z))
    erf = jnp.where(x >= 0.0, erf_abs, -erf_abs)
    return 0.5 * x * (1.0 + erf)


# --------------------- Fused compression kernel (one batch per step) ---------------------
def _compress_kernel(k_ref, v_ref, pos_ref, w1_ref, b1_ref, w2_ref, b2_ref,
                     ko_ref, vo_ref, *, nb, bs, stride, nh, hd):
    # k_ref / v_ref : [S_pad, H*D]   (one batch; seq -> sublanes, head*dim -> 128 lanes)
    # pos_ref       : [1, H*D]       literal-broadcast pos addend (lane h*D+d = pos[0,h,d])
    # w1_ref        : [BS*D, CH]     b1_ref : [1, CH]
    # w2_ref        : [CH, CBS*D]    b2_ref : [1, CBS*D]
    # ko_ref/vo_ref : [NB, H*CBS*D]  (final layout: row = block, lanes = head-major slabs)
    out_e = w2_ref.shape[1]
    pos = pos_ref[...]                                            # loaded once, hoisted

    def head_tiles(src_ref, add_pos):
        # BS strided sublane reads (one per in-block position), full 128-lane rows.
        xs = [src_ref[pl.ds(p, nb, stride=stride), :] for p in range(bs)]   # [NB, H*D] each
        if add_pos:
            xs = [x + pos for x in xs]        # literal module broadcast (pos indexed by head)
        # Per head: take its hd-lane slice from every position and lane-concat -> [NB, BS*D].
        return [jnp.concatenate([x[:, h * hd:(h + 1) * hd] for x in xs], axis=1)
                for h in range(nh)]

    # Row order (kv, head, block): ONE lane-dense [2*NH*NB, BS*D] operand (K = 128).
    lhs = jnp.concatenate(head_tiles(k_ref, True) + head_tiles(v_ref, False), axis=0)

    # Shared compress_mlp, k and v fused along M: two matmuls + one GELU per grid step.
    hid = jnp.dot(lhs, w1_ref[...], preferred_element_type=jnp.float32) + b1_ref[...]
    out = jnp.dot(_gelu_exact(hid), w2_ref[...],
                  preferred_element_type=jnp.float32) + b2_ref[...]
    out = out.astype(ko_ref.dtype)

    # Scatter per-head results into 128-aligned lane slabs of the final-layout outputs.
    for h in range(nh):
        ko_ref[:, pl.ds(h * out_e, out_e)] = out[h * nb:(h + 1) * nb, :]
        vo_ref[:, pl.ds(h * out_e, out_e)] = out[(nh + h) * nb:(nh + h + 1) * nb, :]


# ----------------------------- Forward wrapper -----------------------------
def token_compression(k, v, pos_enc, w1, b1, w2, b2,
                      *, block_size=BLOCK_SIZE, stride=STRIDE, cbs=CBS):
    B, S, H, D = k.shape
    nb = max(1, (S - block_size) // stride + 1)
    ch = w1.shape[1]
    in_feats = block_size * D
    out_feats = cbs * D
    assert w1.shape == (in_feats, ch) and w2.shape == (ch, out_feats)
    # The module's literal broadcast of pos_encoding (1, BS, D) onto (B, BS, H, D)
    # right-aligns BS with H, so it only runs when BS == H (or BS == 1).
    # TODO(synk): only the BS == H case (the one the module itself can execute) is implemented.
    assert pos_enc.shape == (1, block_size, D) and block_size == H

    # Degenerate case (seq_len < block_size): zero-pad the tail like F.pad does.
    need = (nb - 1) * stride + block_size
    if need > S:
        pad = need - S
        k = jnp.pad(k, ((0, 0), (0, pad), (0, 0), (0, 0)))
        v = jnp.pad(v, ((0, 0), (0, pad), (0, 0), (0, 0)))
    s_pad = max(S, need)

    # Free (contiguous) reshapes only — no transpose kernels around the pallas_call.
    k2 = k.reshape(B, s_pad, H * D)
    v2 = v.reshape(B, s_pad, H * D)
    pos_flat = pos_enc.reshape(1, H * D)          # lane (h*D+d) -> pos_enc[0, h, d]
    b1_2d = b1.reshape(1, ch)
    b2_2d = b2.reshape(1, out_feats)

    kernel = partial(_compress_kernel, nb=nb, bs=block_size, stride=stride, nh=H, hd=D)
    const = lambda shape: pl.BlockSpec(shape, lambda b: (0,) * len(shape))
    out_spec = pl.BlockSpec((None, nb, H * out_feats), lambda b: (b, 0, 0))

    ko, vo = pl.pallas_call(
        kernel,
        out_shape=(jax.ShapeDtypeStruct((B, nb, H * out_feats), jnp.float32),
                   jax.ShapeDtypeStruct((B, nb, H * out_feats), jnp.float32)),
        grid_spec=pltpu.PrefetchScalarGridSpec(
            num_scalar_prefetch=0,
            grid=(B,),
            in_specs=[
                pl.BlockSpec((None, s_pad, H * D), lambda b: (b, 0, 0)),
                pl.BlockSpec((None, s_pad, H * D), lambda b: (b, 0, 0)),
                const((1, H * D)),
                const((in_feats, ch)),
                const((1, ch)),
                const((ch, out_feats)),
                const((1, out_feats)),
            ],
            out_specs=(out_spec, out_spec),
        ),
        compiler_params=pltpu.CompilerParams(dimension_semantics=("parallel",)),
    )(k2, v2, pos_flat, w1, b1_2d, w2, b2_2d)

    # Final PyTorch layout via free contiguous splits of the minor dims.
    k_comp = ko.reshape(B, nb, H, cbs, D)
    v_comp = vo.reshape(B, nb, H, cbs, D)
    return k_comp, v_comp


# ------------------------- Pure-JAX reference (literal module semantics) ----------------------
def token_compression_ref(k, v, pos_enc, w1, b1, w2, b2,
                          *, block_size=BLOCK_SIZE, stride=STRIDE, cbs=CBS):
    B, S, H, D = k.shape
    nb = max(1, (S - block_size) // stride + 1)
    k_blocks, v_blocks = [], []
    for i in range(nb):
        s0 = i * stride
        e0 = min(s0 + block_size, S)
        kb, vb = k[:, s0:e0], v[:, s0:e0]
        if e0 - s0 < block_size:
            padn = block_size - (e0 - s0)
            kb = jnp.pad(kb, ((0, 0), (0, padn), (0, 0), (0, 0)))
            vb = jnp.pad(vb, ((0, 0), (0, padn), (0, 0), (0, 0)))
        # Literal module broadcast: (1, BS, D) right-aligned against (B, BS, H, D).
        kb = kb + pos_enc[:, :kb.shape[1]]
        k_blocks.append(kb)
        v_blocks.append(vb)
    kbs = jnp.stack(k_blocks, axis=1)                          # [B, NB, BS, H, D]
    vbs = jnp.stack(v_blocks, axis=1)
    kf = jnp.transpose(kbs, (0, 1, 3, 2, 4)).reshape(B * nb * H, block_size * D)
    vf = jnp.transpose(vbs, (0, 1, 3, 2, 4)).reshape(B * nb * H, block_size * D)

    def mlp(x):
        h = jax.nn.gelu(jnp.dot(x, w1, precision=jax.lax.Precision.HIGHEST) + b1,
                        approximate=False)                     # exact erf GELU (PyTorch default)
        return jnp.dot(h, w2, precision=jax.lax.Precision.HIGHEST) + b2

    return (mlp(kf).reshape(B, nb, H, cbs, D),
            mlp(vf).reshape(B, nb, H, cbs, D))


if __name__ == "__main__":
    key = jax.random.PRNGKey(0)
    kk, kv, kp, kw1, kb1, kw2, kb2 = jax.random.split(key, 7)
    k = jax.random.normal(kk, (BATCH, SEQ, NUM_HEADS, HEAD_DIM), dtype=jnp.float32)
    v = jax.random.normal(kv, (BATCH, SEQ, NUM_HEADS, HEAD_DIM), dtype=jnp.float32)
    # Module parameters (pos_encoding ~ N(0, 0.02), param shape (1, BS, D) as in the module).
    pos_enc = 0.02 * jax.random.normal(kp, (1, BLOCK_SIZE, HEAD_DIM), dtype=jnp.float32)
    w1 = 0.05 * jax.random.normal(kw1, (IN_FEATS, COMP_HIDDEN), dtype=jnp.float32)
    b1 = 0.01 * jax.random.normal(kb1, (COMP_HIDDEN,), dtype=jnp.float32)
    w2 = 0.05 * jax.random.normal(kw2, (COMP_HIDDEN, OUT_FEATS), dtype=jnp.float32)
    b2 = 0.01 * jax.random.normal(kb2, (OUT_FEATS,), dtype=jnp.float32)

    fwd = jax.jit(partial(token_compression, block_size=BLOCK_SIZE, stride=STRIDE, cbs=CBS))
    k_c, v_c = fwd(k, v, pos_enc, w1, b1, w2, b2)
    k_c = jax.block_until_ready(k_c)
    v_c = jax.block_until_ready(v_c)

    assert k_c.shape == (BATCH, NUM_BLOCKS, NUM_HEADS, CBS, HEAD_DIM), k_c.shape
    assert v_c.shape == (BATCH, NUM_BLOCKS, NUM_HEADS, CBS, HEAD_DIM), v_c.shape

    k_r, v_r = token_compression_ref(k, v, pos_enc, w1, b1, w2, b2,
                                     block_size=BLOCK_SIZE, stride=STRIDE, cbs=CBS)
    err_k = float(jnp.max(jnp.abs(k_c - k_r)))
    err_v = float(jnp.max(jnp.abs(v_c - v_r)))
    assert err_k < 2e-3 and err_v < 2e-3, (err_k, err_v)

    print("KERNEL_OK")
</pallas_src>

<mosaic_0001>
module attributes {stable_mosaic.version = 11 : i64} {
  func.func @_compress_kernel(%arg0: i32, %arg1: memref<1x16x128xf32, #tpu.memory_space<vmem>>, %arg2: memref<1x16x128xf32, #tpu.memory_space<vmem>>, %arg3: memref<1x128xf32, #tpu.memory_space<vmem>>, %arg4: memref<128x128xf32, #tpu.memory_space<vmem>>, %arg5: memref<1x128xf32, #tpu.memory_space<vmem>>, %arg6: memref<128x128xf32, #tpu.memory_space<vmem>>, %arg7: memref<1x128xf32, #tpu.memory_space<vmem>>, %arg8: memref<1x7x512xf32, #tpu.memory_space<vmem>>, %arg9: memref<1x7x512xf32, #tpu.memory_space<vmem>>) attributes {dimension_semantics = [#tpu.dimension_semantics<parallel>], iteration_bounds = array<i64: 2>, scalar_prefetch = 0 : i64, scratch_operands = 0 : i64, tpu.core_type = #tpu.core_type<tc>, window_params = [{transform_indices = @transform_0, window_bounds = array<i64: 1, 16, 128>}, {transform_indices = @transform_1, window_bounds = array<i64: 1, 16, 128>}, {pipeline_mode = #tpu.pipeline_mode<synchronous>, transform_indices = @transform_2, window_bounds = array<i64: 1, 128>}, {pipeline_mode = #tpu.pipeline_mode<synchronous>, transform_indices = @transform_3, window_bounds = array<i64: 128, 128>}, {pipeline_mode = #tpu.pipeline_mode<synchronous>, transform_indices = @transform_4, window_bounds = array<i64: 1, 128>}, {pipeline_mode = #tpu.pipeline_mode<synchronous>, transform_indices = @transform_5, window_bounds = array<i64: 128, 128>}, {pipeline_mode = #tpu.pipeline_mode<synchronous>, transform_indices = @transform_6, window_bounds = array<i64: 1, 128>}, {transform_indices = @transform_7, window_bounds = array<i64: 1, 7, 512>}, {transform_indices = @transform_8, window_bounds = array<i64: 1, 7, 512>}]} {
    %c0 = arith.constant 0 : index
    %c0_0 = arith.constant 0 : index
    %0 = vector.load %arg3[%c0, %c0_0] : memref<1x128xf32, #tpu.memory_space<vmem>>, vector<1x128xf32>
    %c0_1 = arith.constant 0 : index
    %c0_2 = arith.constant 0 : index
    %c0_3 = arith.constant 0 : index
    %1 = tpu.strided_load %arg1[%c0_1, %c0_2, %c0_3] {strides = array<i32: 1, 2, 1>} : memref<1x16x128xf32, #tpu.memory_space<vmem>>, vector<1x7x128xf32>
    %2 = vector.shape_cast %1 : vector<1x7x128xf32> to vector<7x128xf32>
    %c0_4 = arith.constant 0 : index
    %c1 = arith.constant 1 : index
    %c0_5 = arith.constant 0 : index
    %3 = tpu.strided_load %arg1[%c0_4, %c1, %c0_5] {strides = array<i32: 1, 2, 1>} : memref<1x16x128xf32, #tpu.memory_space<vmem>>, vector<1x7x128xf32>
    %4 = vector.shape_cast %3 : vector<1x7x128xf32> to vector<7x128xf32>
    %c0_6 = arith.constant 0 : index
    %c2 = arith.constant 2 : index
    %c0_7 = arith.constant 0 : index
    %5 = tpu.strided_load %arg1[%c0_6, %c2, %c0_7] {strides = array<i32: 1, 2, 1>} : memref<1x16x128xf32, #tpu.memory_space<vmem>>, vector<1x7x128xf32>
    %6 = vector.shape_cast %5 : vector<1x7x128xf32> to vector<7x128xf32>
    %c0_8 = arith.constant 0 : index
    %c3 = arith.constant 3 : index
    %c0_9 = arith.constant 0 : index
    %7 = tpu.strided_load %arg1[%c0_8, %c3, %c0_9] {strides = array<i32: 1, 2, 1>} : memref<1x16x128xf32, #tpu.memory_space<vmem>>, vector<1x7x128xf32>
    %8 = vector.shape_cast %7 : vector<1x7x128xf32> to vector<7x128xf32>
    %9 = vector.broadcast %0 : vector<1x128xf32> to vector<7x128xf32>
    %10 = arith.addf %2, %9 : vector<7x128xf32>
    %11 = vector.broadcast %0 : vector<1x128xf32> to vector<7x128xf32>
    %12 = arith.addf %4, %11 : vector<7x128xf32>
    %13 = vector.broadcast %0 : vector<1x128xf32> to vector<7x128xf32>
    %14 = arith.addf %6, %13 : vector<7x128xf32>
    %15 = vector.broadcast %0 : vector<1x128xf32> to vector<7x128xf32>
    %16 = arith.addf %8, %15 : vector<7x128xf32>
    %17 = vector.extract_strided_slice %10 {offsets = [0, 0], sizes = [7, 32], strides = [1, 1]} : vector<7x128xf32> to vector<7x32xf32>
    %18 = vector.extract_strided_slice %12 {offsets = [0, 0], sizes = [7, 32], strides = [1, 1]} : vector<7x128xf32> to vector<7x32xf32>
    %19 = vector.extract_strided_slice %14 {offsets = [0, 0], sizes = [7, 32], strides = [1, 1]} : vector<7x128xf32> to vector<7x32xf32>
    %20 = vector.extract_strided_slice %16 {offsets = [0, 0], sizes = [7, 32], strides = [1, 1]} : vector<7x128xf32> to vector<7x32xf32>
    %21 = tpu.concatenate %17, %18, %19, %20 in 1 : vector<7x32xf32>, vector<7x32xf32>, vector<7x32xf32>, vector<7x32xf32> -> vector<7x128xf32>
    %22 = vector.extract_strided_slice %10 {offsets = [0, 32], sizes = [7, 32], strides = [1, 1]} : vector<7x128xf32> to vector<7x32xf32>
    %23 = vector.extract_strided_slice %12 {offsets = [0, 32], sizes = [7, 32], strides = [1, 1]} : vector<7x128xf32> to vector<7x32xf32>
    %24 = vector.extract_strided_slice %14 {offsets = [0, 32], sizes = [7, 32], strides = [1, 1]} : vector<7x128xf32> to vector<7x32xf32>
    %25 = vector.extract_strided_slice %16 {offsets = [0, 32], sizes = [7, 32], strides = [1, 1]} : vector<7x128xf32> to vector<7x32xf32>
    %26 = tpu.concatenate %22, %23, %24, %25 in 1 : vector<7x32xf32>, vector<7x32xf32>, vector<7x32xf32>, vector<7x32xf32> -> vector<7x128xf32>
    %27 = vector.extract_strided_slice %10 {offsets = [0, 64], sizes = [7, 32], strides = [1, 1]} : vector<7x128xf32> to vector<7x32xf32>
    %28 = vector.extract_strided_slice %12 {offsets = [0, 64], sizes = [7, 32], strides = [1, 1]} : vector<7x128xf32> to vector<7x32xf32>
    %29 = vector.extract_strided_slice %14 {offsets = [0, 64], sizes = [7, 32], strides = [1, 1]} : vector<7x128xf32> to vector<7x32xf32>
    %30 = vector.extract_strided_slice %16 {offsets = [0, 64], sizes = [7, 32], strides = [1, 1]} : vector<7x128xf32> to vector<7x32xf32>
    %31 = tpu.concatenate %27, %28, %29, %30 in 1 : vector<7x32xf32>, vector<7x32xf32>, vector<7x32xf32>, vector<7x32xf32> -> vector<7x128xf32>
    %32 = vector.extract_strided_slice %10 {offsets = [0, 96], sizes = [7, 32], strides = [1, 1]} : vector<7x128xf32> to vector<7x32xf32>
    %33 = vector.extract_strided_slice %12 {offsets = [0, 96], sizes = [7, 32], strides = [1, 1]} : vector<7x128xf32> to vector<7x32xf32>
    %34 = vector.extract_strided_slice %14 {offsets = [0, 96], sizes = [7, 32], strides = [1, 1]} : vector<7x128xf32> to vector<7x32xf32>
    %35 = vector.extract_strided_slice %16 {offsets = [0, 96], sizes = [7, 32], strides = [1, 1]} : vector<7x128xf32> to vector<7x32xf32>
    %36 = tpu.concatenate %32, %33, %34, %35 in 1 : vector<7x32xf32>, vector<7x32xf32>, vector<7x32xf32>, vector<7x32xf32> -> vector<7x128xf32>
    %c0_10 = arith.constant 0 : index
    %c0_11 = arith.constant 0 : index
    %c0_12 = arith.constant 0 : index
    %37 = tpu.strided_load %arg2[%c0_10, %c0_11, %c0_12] {strides = array<i32: 1, 2, 1>} : memref<1x16x128xf32, #tpu.memory_space<vmem>>, vector<1x7x128xf32>
    %38 = vector.shape_cast %37 : vector<1x7x128xf32> to vector<7x128xf32>
    %c0_13 = arith.constant 0 : index
    %c1_14 = arith.constant 1 : index
    %c0_15 = arith.constant 0 : index
    %39 = tpu.strided_load %arg2[%c0_13, %c1_14, %c0_15] {strides = array<i32: 1, 2, 1>} : memref<1x16x128xf32, #tpu.memory_space<vmem>>, vector<1x7x128xf32>
    %40 = vector.shape_cast %39 : vector<1x7x128xf32> to vector<7x128xf32>
    %c0_16 = arith.constant 0 : index
    %c2_17 = arith.constant 2 : index
    %c0_18 = arith.constant 0 : index
    %41 = tpu.strided_load %arg2[%c0_16, %c2_17, %c0_18] {strides = array<i32: 1, 2, 1>} : memref<1x16x128xf32, #tpu.memory_space<vmem>>, vector<1x7x128xf32>
    %42 = vector.shape_cast %41 : vector<1x7x128xf32> to vector<7x128xf32>
    %c0_19 = arith.constant 0 : index
    %c3_20 = arith.constant 3 : index
    %c0_21 = arith.constant 0 : index
    %43 = tpu.strided_load %arg2[%c0_19, %c3_20, %c0_21] {strides = array<i32: 1, 2, 1>} : memref<1x16x128xf32, #tpu.memory_space<vmem>>, vector<1x7x128xf32>
    %44 = vector.shape_cast %43 : vector<1x7x128xf32> to vector<7x128xf32>
    %45 = vector.extract_strided_slice %38 {offsets = [0, 0], sizes = [7, 32], strides = [1, 1]} : vector<7x128xf32> to vector<7x32xf32>
    %46 = vector.extract_strided_slice %40 {offsets = [0, 0], sizes = [7, 32], strides = [1, 1]} : vector<7x128xf32> to vector<7x32xf32>
    %47 = vector.extract_strided_slice %42 {offsets = [0, 0], sizes = [7, 32], strides = [1, 1]} : vector<7x128xf32> to vector<7x32xf32>
    %48 = vector.extract_strided_slice %44 {offsets = [0, 0], sizes = [7, 32], strides = [1, 1]} : vector<7x128xf32> to vector<7x32xf32>
    %49 = tpu.concatenate %45, %46, %47, %48 in 1 : vector<7x32xf32>, vector<7x32xf32>, vector<7x32xf32>, vector<7x32xf32> -> vector<7x128xf32>
    %50 = vector.extract_strided_slice %38 {offsets = [0, 32], sizes = [7, 32], strides = [1, 1]} : vector<7x128xf32> to vector<7x32xf32>
    %51 = vector.extract_strided_slice %40 {offsets = [0, 32], sizes = [7, 32], strides = [1, 1]} : vector<7x128xf32> to vector<7x32xf32>
    %52 = vector.extract_strided_slice %42 {offsets = [0, 32], sizes = [7, 32], strides = [1, 1]} : vector<7x128xf32> to vector<7x32xf32>
    %53 = vector.extract_strided_slice %44 {offsets = [0, 32], sizes = [7, 32], strides = [1, 1]} : vector<7x128xf32> to vector<7x32xf32>
    %54 = tpu.concatenate %50, %51, %52, %53 in 1 : vector<7x32xf32>, vector<7x32xf32>, vector<7x32xf32>, vector<7x32xf32> -> vector<7x128xf32>
    %55 = vector.extract_strided_slice %38 {offsets = [0, 64], sizes = [7, 32], strides = [1, 1]} : vector<7x128xf32> to vector<7x32xf32>
    %56 = vector.extract_strided_slice %40 {offsets = [0, 64], sizes = [7, 32], strides = [1, 1]} : vector<7x128xf32> to vector<7x32xf32>
    %57 = vector.extract_strided_slice %42 {offsets = [0, 64], sizes = [7, 32], strides = [1, 1]} : vector<7x128xf32> to vector<7x32xf32>
    %58 = vector.extract_strided_slice %44 {offsets = [0, 64], sizes = [7, 32], strides = [1, 1]} : vector<7x128xf32> to vector<7x32xf32>
    %59 = tpu.concatenate %55, %56, %57, %58 in 1 : vector<7x32xf32>, vector<7x32xf32>, vector<7x32xf32>, vector<7x32xf32> -> vector<7x128xf32>
    %60 = vector.extract_strided_slice %38 {offsets = [0, 96], sizes = [7, 32], strides = [1, 1]} : vector<7x128xf32> to vector<7x32xf32>
    %61 = vector.extract_strided_slice %40 {offsets = [0, 96], sizes = [7, 32], strides = [1, 1]} : vector<7x128xf32> to vector<7x32xf32>
    %62 = vector.extract_strided_slice %42 {offsets = [0, 96], sizes = [7, 32], strides = [1, 1]} : vector<7x128xf32> to vector<7x32xf32>
    %63 = vector.extract_strided_slice %44 {offsets = [0, 96], sizes = [7, 32], strides = [1, 1]} : vector<7x128xf32> to vector<7x32xf32>
    %64 = tpu.concatenate %60, %61, %62, %63 in 1 : vector<7x32xf32>, vector<7x32xf32>, vector<7x32xf32>, vector<7x32xf32> -> vector<7x128xf32>
    %65 = tpu.concatenate %21, %26, %31, %36, %49, %54, %59, %64 in 0 : vector<7x128xf32>, vector<7x128xf32>, vector<7x128xf32>, vector<7x128xf32>, vector<7x128xf32>, vector<7x128xf32>, vector<7x128xf32>, vector<7x128xf32> -> vector<56x128xf32>
    %c0_22 = arith.constant 0 : index
    %c0_23 = arith.constant 0 : index
    %66 = vector.load %arg4[%c0_22, %c0_23] : memref<128x128xf32, #tpu.memory_space<vmem>>, vector<128x128xf32>
    %cst = arith.constant dense<0.000000e+00> : vector<56x128xf32>
    %67 = tpu.matmul %65, %66, %cst {dimension_numbers = #tpu.dot_dimension_numbers<[1], [0], [0], [1], [0, 0, 1, 1], [], []>} : vector<56x128xf32>, vector<128x128xf32>, vector<56x128xf32> -> vector<56x128xf32>
    %c0_24 = arith.constant 0 : index
    %c0_25 = arith.constant 0 : index
    %68 = vector.load %arg5[%c0_24, %c0_25] : memref<1x128xf32, #tpu.memory_space<vmem>>, vector<1x128xf32>
    %69 = vector.broadcast %68 : vector<1x128xf32> to vector<56x128xf32>
    %70 = arith.addf %67, %69 : vector<56x128xf32>
    %71 = math.absf %70 : vector<56x128xf32>
    %cst_26 = arith.constant 0.707106769 : f32
    %72 = vector.broadcast %cst_26 : f32 to vector<56x128xf32>
    %73 = arith.mulf %71, %72 : vector<56x128xf32>
    %cst_27 = arith.constant 0.327591091 : f32
    %74 = vector.broadcast %cst_27 : f32 to vector<56x128xf32>
    %75 = arith.mulf %74, %73 : vector<56x128xf32>
    %cst_28 = arith.constant 1.000000e+00 : f32
    %76 = vector.broadcast %cst_28 : f32 to vector<56x128xf32>
    %77 = arith.addf %76, %75 : vector<56x128xf32>
    %cst_29 = arith.constant 1.000000e+00 : f32
    %78 = vector.broadcast %cst_29 : f32 to vector<56x128xf32>
    %79 = arith.divf %78, %77 : vector<56x128xf32>
    %cst_30 = arith.constant 1.06140542 : f32
    %80 = vector.broadcast %cst_30 : f32 to vector<56x128xf32>
    %81 = arith.mulf %80, %79 : vector<56x128xf32>
    %cst_31 = arith.constant -1.45315206 : f32
    %82 = vector.broadcast %cst_31 : f32 to vector<56x128xf32>
    %83 = arith.addf %81, %82 : vector<56x128xf32>
    %84 = arith.mulf %83, %79 : vector<56x128xf32>
    %cst_32 = arith.constant 1.42141378 : f32
    %85 = vector.broadcast %cst_32 : f32 to vector<56x128xf32>
    %86 = arith.addf %84, %85 : vector<56x128xf32>
    %87 = arith.mulf %86, %79 : vector<56x128xf32>
    %cst_33 = arith.constant -0.284496725 : f32
    %88 = vector.broadcast %cst_33 : f32 to vector<56x128xf32>
    %89 = arith.addf %87, %88 : vector<56x128xf32>
    %90 = arith.mulf %89, %79 : vector<56x128xf32>
    %cst_34 = arith.constant 0.254829586 : f32
    %91 = vector.broadcast %cst_34 : f32 to vector<56x128xf32>
    %92 = arith.addf %90, %91 : vector<56x128xf32>
    %93 = arith.mulf %92, %79 : vector<56x128xf32>
    %94 = arith.mulf %73, %73 : vector<56x128xf32>
    %cst_35 = arith.constant 0.000000e+00 : f32
    %95 = vector.broadcast %cst_35 : f32 to vector<56x128xf32>
    %96 = arith.subf %95, %94 : vector<56x128xf32>
    %97 = math.exp %96 : vector<56x128xf32>
    %98 = arith.mulf %93, %97 : vector<56x128xf32>
    %cst_36 = arith.constant 1.000000e+00 : f32
    %99 = vector.broadcast %cst_36 : f32 to vector<56x128xf32>
    %100 = arith.subf %99, %98 : vector<56x128xf32>
    %cst_37 = arith.constant 0.000000e+00 : f32
    %101 = vector.broadcast %cst_37 : f32 to vector<56x128xf32>
    %102 = arith.cmpf oge, %70, %101 : vector<56x128xf32>
    %cst_38 = arith.constant 0.000000e+00 : f32
    %103 = vector.broadcast %cst_38 : f32 to vector<56x128xf32>
    %104 = arith.subf %103, %100 : vector<56x128xf32>
    %105 = arith.select %102, %100, %104 : vector<56x128xi1>, vector<56x128xf32>
    %cst_39 = arith.constant 5.000000e-01 : f32
    %106 = vector.broadcast %cst_39 : f32 to vector<56x128xf32>
    %107 = arith.mulf %106, %70 : vector<56x128xf32>
    %cst_40 = arith.constant 1.000000e+00 : f32
    %108 = vector.broadcast %cst_40 : f32 to vector<56x128xf32>
    %109 = arith.addf %108, %105 : vector<56x128xf32>
    %110 = arith.mulf %107, %109 : vector<56x128xf32>
    %c0_41 = arith.constant 0 : index
    %c0_42 = arith.constant 0 : index
    %111 = vector.load %arg6[%c0_41, %c0_42] : memref<128x128xf32, #tpu.memory_space<vmem>>, vector<128x128xf32>
    %cst_43 = arith.constant dense<0.000000e+00> : vector<56x128xf32>
    %112 = tpu.matmul %110, %111, %cst_43 {dimension_numbers = #tpu.dot_dimension_numbers<[1], [0], [0], [1], [0, 0, 1, 1], [], []>} : vector<56x128xf32>, vector<128x128xf32>, vector<56x128xf32> -> vector<56x128xf32>
    %c0_44 = arith.constant 0 : index
    %c0_45 = arith.constant 0 : index
    %113 = vector.load %arg7[%c0_44, %c0_45] : memref<1x128xf32, #tpu.memory_space<vmem>>, vector<1x128xf32>
    %114 = vector.broadcast %113 : vector<1x128xf32> to vector<56x128xf32>
    %115 = arith.addf %112, %114 : vector<56x128xf32>
    %116 = vector.extract_strided_slice %115 {offsets = [0, 0], sizes = [7, 128], strides = [1, 1]} : vector<56x128xf32> to vector<7x128xf32>
    %c0_46 = arith.constant 0 : index
    %c0_47 = arith.constant 0 : index
    %c0_48 = arith.constant 0 : index
    %117 = vector.load %arg8[%c0_46, %c0_47, %c0_48] : memref<1x7x512xf32, #tpu.memory_space<vmem>>, vector<1x7x128xf32>
    %118 = vector.shape_cast %117 : vector<1x7x128xf32> to vector<7x128xf32>
    %119 = vector.shape_cast %116 : vector<7x128xf32> to vector<1x7x128xf32>
    tpu.vector_store %arg8[%c0_46, %c0_47, %c0_48], %119 {strides = array<i32>} : memref<1x7x512xf32, #tpu.memory_space<vmem>>, vector<1x7x128xf32>,
    %120 = vector.extract_strided_slice %115 {offsets = [28, 0], sizes = [7, 128], strides = [1, 1]} : vector<56x128xf32> to vector<7x128xf32>
    %c0_49 = arith.constant 0 : index
    %c0_50 = arith.constant 0 : index
    %c0_51 = arith.constant 0 : index
    %121 = vector.load %arg9[%c0_49, %c0_50, %c0_51] : memref<1x7x512xf32, #tpu.memory_space<vmem>>, vector<1x7x128xf32>
    %122 = vector.shape_cast %121 : vector<1x7x128xf32> to vector<7x128xf32>
    %123 = vector.shape_cast %120 : vector<7x128xf32> to vector<1x7x128xf32>
    tpu.vector_store %arg9[%c0_49, %c0_50, %c0_51], %123 {strides = array<i32>} : memref<1x7x512xf32, #tpu.memory_space<vmem>>, vector<1x7x128xf32>,
    %124 = vector.extract_strided_slice %115 {offsets = [7, 0], sizes = [7, 128], strides = [1, 1]} : vector<56x128xf32> to vector<7x128xf32>
    %c0_52 = arith.constant 0 : index
    %c0_53 = arith.constant 0 : index
    %c128 = arith.constant 128 : index
    %125 = vector.load %arg8[%c0_52, %c0_53, %c128] : memref<1x7x512xf32, #tpu.memory_space<vmem>>, vector<1x7x128xf32>
    %126 = vector.shape_cast %125 : vector<1x7x128xf32> to vector<7x128xf32>
    %127 = vector.shape_cast %124 : vector<7x128xf32> to vector<1x7x128xf32>
    tpu.vector_store %arg8[%c0_52, %c0_53, %c128], %127 {strides = array<i32>} : memref<1x7x512xf32, #tpu.memory_space<vmem>>, vector<1x7x128xf32>,
    %128 = vector.extract_strided_slice %115 {offsets = [35, 0], sizes = [7, 128], strides = [1, 1]} : vector<56x128xf32> to vector<7x128xf32>
    %c0_54 = arith.constant 0 : index
    %c0_55 = arith.constant 0 : index
    %c128_56 = arith.constant 128 : index
    %129 = vector.load %arg9[%c0_54, %c0_55, %c128_56] : memref<1x7x512xf32, #tpu.memory_space<vmem>>, vector<1x7x128xf32>
    %130 = vector.shape_cast %129 : vector<1x7x128xf32> to vector<7x128xf32>
    %131 = vector.shape_cast %128 : vector<7x128xf32> to vector<1x7x128xf32>
    tpu.vector_store %arg9[%c0_54, %c0_55, %c128_56], %131 {strides = array<i32>} : memref<1x7x512xf32, #tpu.memory_space<vmem>>, vector<1x7x128xf32>,
    %132 = vector.extract_strided_slice %115 {offsets = [14, 0], sizes = [7, 128], strides = [1, 1]} : vector<56x128xf32> to vector<7x128xf32>
    %c0_57 = arith.constant 0 : index
    %c0_58 = arith.constant 0 : index
    %c256 = arith.constant 256 : index
    %133 = vector.load %arg8[%c0_57, %c0_58, %c256] : memref<1x7x512xf32, #tpu.memory_space<vmem>>, vector<1x7x128xf32>
    %134 = vector.shape_cast %133 : vector<1x7x128xf32> to vector<7x128xf32>
    %135 = vector.shape_cast %132 : vector<7x128xf32> to vector<1x7x128xf32>
    tpu.vector_store %arg8[%c0_57, %c0_58, %c256], %135 {strides = array<i32>} : memref<1x7x512xf32, #tpu.memory_space<vmem>>, vector<1x7x128xf32>,
    %136 = vector.extract_strided_slice %115 {offsets = [42, 0], sizes = [7, 128], strides = [1, 1]} : vector<56x128xf32> to vector<7x128xf32>
    %c0_59 = arith.constant 0 : index
    %c0_60 = arith.constant 0 : index
    %c256_61 = arith.constant 256 : index
    %137 = vector.load %arg9[%c0_59, %c0_60, %c256_61] : memref<1x7x512xf32, #tpu.memory_space<vmem>>, vector<1x7x128xf32>
    %138 = vector.shape_cast %137 : vector<1x7x128xf32> to vector<7x128xf32>
    %139 = vector.shape_cast %136 : vector<7x128xf32> to vector<1x7x128xf32>
    tpu.vector_store %arg9[%c0_59, %c0_60, %c256_61], %139 {strides = array<i32>} : memref<1x7x512xf32, #tpu.memory_space<vmem>>, vector<1x7x128xf32>,
    %140 = vector.extract_strided_slice %115 {offsets = [21, 0], sizes = [7, 128], strides = [1, 1]} : vector<56x128xf32> to vector<7x128xf32>
    %c0_62 = arith.constant 0 : index
    %c0_63 = arith.constant 0 : index
    %c384 = arith.constant 384 : index
    %141 = vector.load %arg8[%c0_62, %c0_63, %c384] : memref<1x7x512xf32, #tpu.memory_space<vmem>>, vector<1x7x128xf32>
    %142 = vector.shape_cast %141 : vector<1x7x128xf32> to vector<7x128xf32>
    %143 = vector.shape_cast %140 : vector<7x128xf32> to vector<1x7x128xf32>
    tpu.vector_store %arg8[%c0_62, %c0_63, %c384], %143 {strides = array<i32>} : memref<1x7x512xf32, #tpu.memory_space<vmem>>, vector<1x7x128xf32>,
    %144 = vector.extract_strided_slice %115 {offsets = [49, 0], sizes = [7, 128], strides = [1, 1]} : vector<56x128xf32> to vector<7x128xf32>
    %c0_64 = arith.constant 0 : index
    %c0_65 = arith.constant 0 : index
    %c384_66 = arith.constant 384 : index
    %145 = vector.load %arg9[%c0_64, %c0_65, %c384_66] : memref<1x7x512xf32, #tpu.memory_space<vmem>>, vector<1x7x128xf32>
    %146 = vector.shape_cast %145 : vector<1x7x128xf32> to vector<7x128xf32>
    %147 = vector.shape_cast %144 : vector<7x128xf32> to vector<1x7x128xf32>
    tpu.vector_store %arg9[%c0_64, %c0_65, %c384_66], %147 {strides = array<i32>} : memref<1x7x512xf32, #tpu.memory_space<vmem>>, vector<1x7x128xf32>,
    return
  }
  func.func @transform_0(%arg0: i32) -> (i32, i32, i32) {
    %c0_i32 = arith.constant 0 : i32
    %c0_i32_0 = arith.constant 0 : i32
    %c0_i32_1 = arith.constant 0 : i32
    return %arg0, %c0_i32, %c0_i32_0 : i32, i32, i32
  }
  func.func @transform_1(%arg0: i32) -> (i32, i32, i32) {
    %c0_i32 = arith.constant 0 : i32
    %c0_i32_0 = arith.constant 0 : i32
    %c0_i32_1 = arith.constant 0 : i32
    return %arg0, %c0_i32, %c0_i32_0 : i32, i32, i32
  }
  func.func @transform_2(%arg0: i32) -> (i32, i32) {
    %c0_i32 = arith.constant 0 : i32
    %c0_i32_0 = arith.constant 0 : i32
    %c0_i32_1 = arith.constant 0 : i32
    return %c0_i32, %c0_i32_0 : i32, i32
  }
  func.func @transform_3(%arg0: i32) -> (i32, i32) {
    %c0_i32 = arith.constant 0 : i32
    %c0_i32_0 = arith.constant 0 : i32
    %c0_i32_1 = arith.constant 0 : i32
    return %c0_i32, %c0_i32_0 : i32, i32
  }
  func.func @transform_4(%arg0: i32) -> (i32, i32) {
    %c0_i32 = arith.constant 0 : i32
    %c0_i32_0 = arith.constant 0 : i32
    %c0_i32_1 = arith.constant 0 : i32
    return %c0_i32, %c0_i32_0 : i32, i32
  }
  func.func @transform_5(%arg0: i32) -> (i32, i32) {
    %c0_i32 = arith.constant 0 : i32
    %c0_i32_0 = arith.constant 0 : i32
    %c0_i32_1 = arith.constant 0 : i32
    return %c0_i32, %c0_i32_0 : i32, i32
  }
  func.func @transform_6(%arg0: i32) -> (i32, i32) {
    %c0_i32 = arith.constant 0 : i32
    %c0_i32_0 = arith.constant 0 : i32
    %c0_i32_1 = arith.constant 0 : i32
    return %c0_i32, %c0_i32_0 : i32, i32
  }
  func.func @transform_7(%arg0: i32) -> (i32, i32, i32) {
    %c0_i32 = arith.constant 0 : i32
    %c0_i32_0 = arith.constant 0 : i32
    %c0_i32_1 = arith.constant 0 : i32
    return %arg0, %c0_i32, %c0_i32_0 : i32, i32, i32
  }
  func.func @transform_8(%arg0: i32) -> (i32, i32, i32) {
    %c0_i32 = arith.constant 0 : i32
    %c0_i32_0 = arith.constant 0 : i32
    %c0_i32_1 = arith.constant 0 : i32
    return %arg0, %c0_i32, %c0_i32_0 : i32, i32, i32
  }
}

</mosaic_0001>

<bundles_post_ra>
// kernel: token_compression.1
= control target key start
LH: loop header
LB: loop body
LE: loop exit
PB: predicated region body
PF: predicated region fallthrough
CT: control target
= control target key end

     0   :  { %14 = vsyncpa [#allocation3], 0  ;;  %s1538_s27 = smov 0   ;;  %s1894_s0 = inlined_call_operand.vmem [shape: f32[2,16,128], index: 0, kind: input, shape index: {}]   ;;  %s1895_s1 = inlined_call_operand.vmem [shape: f32[2,16,128], index: 1, kind: input, shape index: {}]   ;;  %s1896_s2 = inlined_call_operand.vmem [shape: f32[1,128], index: 2, kind: input, shape index: {}]   ;;  %s1897_s3 = inlined_call_operand.vmem [shape: f32[128,128], index: 3, kind: input, shape index: {}]   ;;  %s1898_s4 = inlined_call_operand.vmem [shape: f32[1,128], index: 4, kind: input, shape index: {}]   ;;  %s1899_s5 = inlined_call_operand.hbm [shape: f32[128,128], index: 5, kind: input, shape index: {}]   ;;  %s1900_s6 = inlined_call_operand.vmem [shape: f32[1,128], index: 6, kind: input, shape index: {}]   ;;  %s1901_s7 = inlined_call_operand.vmem [shape: f32[2,7,512], index: 7, kind: output, shape index: {0}]   ;;  %s1902_s8 = inlined_call_operand.vmem [shape: f32[2,7,512], index: 8, kind: output, shape index: {1}]  }
   0x1 LB: > { %s1544_s28 = sadd.s32 4294967295, %s1482_s27   ;;  %p1111_p0 = scmp.ge.s32.totalorder %s1482_s27, 1  ;;  %s1482_s27 = sphi %s1538_s27, %s20_s27  }
   0x2   : > { %p234_p1 = scmp.lt.s32.totalorder %s1482_s27, 3  ;;  %s1484_s29 = smov [#allocation2]  }
   0x3   : > { %s255_s30 = sshll.u32 %s1484_s29, 4  ;;  %p1903_p3 = scmp.eq.s32.totalorder %s1544_s28, 0  ;;  %s256_s30 = int_to_ptr.vmem [resolvable:$true] %s255_s30 }
   0x4   : > { %p1548_p2 = pnand %p1111_p0, %p234_p1  ;;  %s1444_s13 = scalar_lea.hbm %s1899_s5, 2048 }
   0x5   : > { %p1445_p6 = scmp.ne.s32.totalorder %s1899_s5, %s1444_s13  ;;  %p1451_p10 = scmp.lt.u32.totalorder %s1444_s13, %s1899_s5 }
   0x6   : > { %s1905_s9 = scalar_select %p1548_p2, 1, 0 }
   0x7   : > { %p1343_p4 = pneg %p1548_p2 }
   0x9   : > { %p1557_p5 = pnand %p1903_p3, %p1343_p4 }
   0xb   : > { %p1446_p7 = pneg %p1557_p5 }
   0xd   : > { %p1447_p8 = pnand %p1446_p7, %p1445_p6 }
   0xf   : > { %p1448_p9 = pneg %p1447_p8 }
  0x11   : > { %p1453_p11 = pnand %p1451_p10, %p1448_p9 }
  0x13   : > { %1456 = shalt.err (!%p1453_p11)
}
  0x14   : > { %s1457_s18 = scalar_lea.vmem %s256_s30, 2048  ;;  %p1465_p1 = scmp.lt.s32.totalorder %s256_s30, %s256_s30 }
  0x15   : > { %p1458_p12 = scmp.ne.s32.totalorder %s256_s30, %s1457_s18  ;;  %p1466_p4 = scmp.lt.s32.totalorder %s1457_s18, %s1457_s18 }
  0x17   : > { %p1460_p13 = pnand %p1458_p12, %p1446_p7  ;;  %p1467_p3 = por %p1466_p4, %p1465_p1 }
  0x19   : > { %p1461_p0 = pneg %p1460_p13 }
  0x1b   : > { %p1468_p2 = pnand %p1467_p3, %p1461_p0 }
  0x1d   : > { %1471 = shalt.err (!%p1468_p2)
}
  0x1e   : > { %s1485_s19 = smov 128   ;;  %s1486_s20 = smov 8  }
  0x1f   : > { %1346 = dma.hbm_to_vmem [thread:$0]  (!%p1557_p5), %s1899_s5, 2048, %s256_s30, [#allocation3], %s1485_s19, %s1485_s19, %s1486_s20  }
  0x20   : > { %p1907_p6 = scmp.ne.s32.totalorder %s1905_s9, 0 }
  0x21   : > { %p1908_p8 = scmp.eq.s32.totalorder (!%p1907_p6), %s1544_s28, 0 }
  0x22   : > { %290 = sbr.rel (%p1907_p6) target bundleno = 685 (0x2ad), region = 48 }
  0x29   : > { %1477 = dma.done.wait (%p1908_p8), [#allocation3], 2048   ;;  %p1909_p7 = pmov %p1908_p8 }
  0x2a   : > { %p334_p2 = scmp.lt.s32.totalorder %s1544_s28, 1  ;;  %v1487_v0 = vmov 0.0|0.0   ;;  %v1127_v1 = vld [vmem:[%s1896_s2] ss:$0 sm:$0xff]  ;;  %v522_v13 = vld [vmem:[%s1897_s3 + $0x8] sm:$0xff]  ;;  %v523_v14 = vld [vmem:[%s1897_s3 + $0x10] sm:$0xff] }
  0x2b   : > { %1479 = vsyncadd (%p1909_p7), [#allocation3], 4294965248  ;;  %1291 = vmatprep.subr.bf16.mxu0 %v1487_v0  ;;  %1315 = vmatprep.subr.bf16.mxu1 %v1487_v0  ;;  %v521_v10 = vld [vmem:[%s1897_s3] sm:$0xff]  ;;  %v524_v15 = vld [vmem:[%s1897_s3 + $0x18] sm:$0xff]  ;;  %s1488_s17 = smov 64   ;;  %s1489_s18 = smov 96  }
  0x2c   : > { %s1911_s28 = smov (!%p334_p2, %s1544_s28), 1  ;;  %v1292_v18 = vpack.c.bf16 %v522_v13, %v521_v10  ;;  %v1295_v19 = vpack.c.bf16 %v524_v15, %v523_v14  ;;  %vm1490_vm0 = vmmov 0   ;;  %v1491_v20 = vmov 0.0   ;;  %v525_v21 = vld [vmem:[%s1897_s3 + $0x20] sm:$0xff]  ;;  %v526_v22 = vld [vmem:[%s1897_s3 + $0x28] sm:$0xff]  ;;  %v527_v29 = vld [vmem:[%s1897_s3 + $0x30] sm:$0xff] }
  0x2d   : > { %s1135_s23 = sshll.u32 %s1911_s28, 4  ;;  %1217 = vmatprep.mubr.msk.f32.mxu0 %vm1490_vm0, %v1491_v20  ;;  %1270 = vmatprep.mubr.msk.f32.mxu1 %vm1490_vm0, %v1491_v20  ;;  %v1298_v28 = vpack.c.bf16 %v526_v22, %v525_v21  ;;  %v528_v30 = vld [vmem:[%s1897_s3 + $0x38] sm:$0xff]  ;;  %v529_v35 = vld [vmem:[%s1897_s3 + $0x40] sm:$0xff]  ;;  %v530_v36 = vld [vmem:[%s1897_s3 + $0x48] sm:$0xff]  ;;  %vm384_vm1 = vcmask 261120   ;;  %vm386_vm2 = vcmask 523264  }
  0x2e   : > { %s338_s26 = scalar_lea.vmem %s1894_s0, %s1135_s23  ;;  %s343_s21 = scalar_lea.vmem %s1895_s1, %s1135_s23  ;;  %1293 = vmatpush3.bf16.msra.mxu0 %v1292_v18  ;;  %v1301_v34 = vpack.c.bf16 %v528_v30, %v527_v29  ;;  %v1304_v38 = vpack.c.bf16 %v530_v36, %v529_v35  ;;  %v531_v39 = vld [vmem:[%s1897_s3 + $0x50] sm:$0xff]  ;;  %v532_v40 = vld [vmem:[%s1897_s3 + $0x58] sm:$0xff]  ;;  %v533_v42 = vld [vmem:[%s1897_s3 + $0x60] sm:$0xff]  ;;  %vm388_vm3 = vcmask 785408   ;;  %vm507_vm4 = vcmask 1046528  }
  0x2f   : > { %v1125_v2 = vld [vmem:[%s338_s26 + $0x2] ss:$2 sm:$0x7f]  ;;  %v1126_v3 = vld [vmem:[%s338_s26 + $0x3] ss:$2 sm:$0x7f]  ;;  %1294 = vmatprep.subr.bf16.mxu0 %v1487_v0  ;;  %v1307_v41 = vpack.c.bf16 %v532_v40, %v531_v39 }
  0x30   : > { %v1596_v4 = vadd.f32 %v1127_v1, %v1125_v2  ;;  %v355_v5 = vld [vmem:[%s338_s26] ss:$2 sm:$0x7f]  ;;  %v1598_v6 = vadd.f32 %v1127_v1, %v1126_v3  ;;  %v1124_v8 = vld [vmem:[%s338_s26 + $0x1] ss:$2 sm:$0x7f] }
  0x31   : > { %v1600_v7 = vadd.f32 %v1127_v1, %v355_v5  ;;  %v1602_v9 = vadd.f32 %v1127_v1, %v1124_v8  ;;  %s1492_s23 = smov 32   ;;  %v1646_v25 = vld [vmem:[%s343_s21 + $0x2] ss:$2 sm:$0x7f]  ;;  %v535_v45 = vld [vmem:[%s1897_s3 + $0x70] sm:$0xff]  ;;  %v536_v46 = vld [vmem:[%s1897_s3 + $0x78] sm:$0xff] }
  0x32   : > { %v1376_v11 = vpack.i.bf16 %v1596_v4, %v1598_v6  ;;  %v1648_v26 = vld [vmem:[%s343_s21 + $0x3] ss:$2 sm:$0x7f]  ;;  %1296 = vmatpush3.bf16.msra.mxu0 %v1295_v19  ;;  %v1665_v33 = vld [vmem:[%s343_s21] ss:$2 sm:$0x7f]  ;;  %v1313_v47 = vpack.c.bf16 %v536_v46, %v535_v45 }
  0x33   : > { %v1366_v12 = vpack.i.bf16 %v1598_v6, %v1600_v7  ;;  %v1381_v16 = vpack.i.bf16 %v1602_v9, %v1600_v7  ;;  %v1371_v17 = vpack.i.bf16 %v1602_v9, %v1596_v4  ;;  %v1391_v23 = vpack.i.bf16 %v1600_v7, %v1598_v6  ;;  %v1650_v27 = vld [vmem:[%s343_s21 + $0x1] ss:$2 sm:$0x7f]  ;;  %1297 = vmatprep.subr.bf16.mxu0 %v1487_v0 }
  0x34   : > { %1377 = vrot.lane.b32.xlu1 %v1376_v11, %s1488_s17  ;;  %v1386_v24 = vpack.i.bf16 %v1596_v4, %v1602_v9  ;;  %v1401_v31 = vpack.i.bf16 %v1648_v26, %v1646_v25  ;;  %v1396_v32 = vpack.i.bf16 %v1646_v25, %v1650_v27  ;;  %v1406_v37 = vpack.i.bf16 %v1665_v33, %v1648_v26  ;;  %v534_v43 = vld [vmem:[%s1897_s3 + $0x68] sm:$0xff] }
  0x35   : > { %1367 = vrot.lane.b32.xlu0 %v1366_v12, %s1489_s18  ;;  %v1310_v44 = vpack.c.bf16 %v534_v43, %v533_v42  ;;  %vm509_vm5 = vcmask 1045504   ;;  %vm511_vm6 = vcmask 1044480   ;;  %vm513_vm7 = vcmask 1043456  }
  0x36   : > { %1299 = vmatpush3.bf16.msra.mxu0 %v1298_v28  ;;  %vm515_vm8 = vcmask 1042432   ;;  %vm517_vm9 = vcmask 1041408   ;;  %vm519_vm10 = vcmask 1040384  }
  0x37   : > { %1300 = vmatprep.subr.bf16.mxu0 %v1487_v0 }
  0x38   : > { %1382 = vrot.lane.b32.xlu1 %v1381_v16, %s1488_s17 }
  0x39   : > { %1372 = vrot.lane.b32.xlu0 %v1371_v17, %s1492_s23 }
  0x3a   : > { %1302 = vmatpush3.bf16.msra.mxu0 %v1301_v34 }
  0x3b   : > { %1303 = vmatprep.subr.bf16.mxu0 %v1487_v0 }
  0x3c   : > { %1392 = vrot.lane.b32.xlu1 %v1391_v23, %s1492_s23 }
  0x3d   : > { %1387 = vrot.lane.b32.xlu0 %v1386_v24, %s1489_s18 }
  0x3e   : > { %1305 = vmatpush3.bf16.msra.mxu0 %v1304_v38 }
  0x3f   : > { %1306 = vmatprep.subr.bf16.mxu0 %v1487_v0 }
  0x40   : > { %1402 = vrot.lane.b32.xlu1 %v1401_v31, %s1488_s17 }
  0x41   : > { %1397 = vrot.lane.b32.xlu0 %v1396_v32, %s1492_s23 }
  0x42   : > { %1308 = vmatpush3.bf16.msra.mxu0 %v1307_v41 }
  0x43   : > { %1309 = vmatprep.subr.bf16.mxu0 %v1487_v0 }
  0x44   : > { %462 = vrot.lane.b32.xlu1 %v1665_v33, %s1488_s17 }
  0x45   : > { %1407 = vrot.lane.b32.xlu0 %v1406_v37, %s1489_s18 }
  0x46   : > { %1311 = vmatpush3.bf16.msra.mxu0 %v1310_v44 }
  0x47   : > { %1312 = vmatprep.subr.bf16.mxu0 %v1487_v0 }
  0x48   : > { %1412 = vrot.lane.b32.xlu1 %v1406_v37, %s1492_s23  ;;  %s1137_s23 = sshll.u32 %s1911_s28, 5 }
  0x49   : > { %465 = vrot.lane.b32.xlu0 %v1650_v27, %s1489_s18  ;;  %s348_s14 = scalar_lea.vmem %s1901_s7, %s1137_s23  ;;  %s353_s19 = scalar_lea.vmem %s1902_s8, %s1137_s23 }
  0x4a   : > { %1314 = vmatpush3.bf16.msra.mxu0 %v1313_v47 }
  0x4c   : > { %480 = vrot.lane.b32.xlu1 %v1646_v25, %s1489_s18 }
  0x4d   : > { %477 = vrot.lane.b32.xlu0 %v1650_v27, %s1488_s17 }
  0xa6   : > { %v1378_v48 = vpop.permute.xlu1 %1377 }
  0xa7   : > { %v1368_v49 = vpop.permute.xlu0 %1367  ;;  %v1380_v55 = vunpack.i.h.bf16 %v1378_v48  ;;  %v1379_v56 = vunpack.i.l.bf16 %v1378_v48 }
  0xa8   : > { %v1369_v50 = vunpack.i.l.bf16 %v1368_v49  ;;  %v1370_v60 = vunpack.i.h.bf16 %v1368_v49 }
  0xaa   : > { %v1383_v51 = vpop.permute.xlu1 %1382  ;;  %v400_v57 = vsel %vm384_vm1, %v1369_v50, %v1602_v9 }
  0xab   : > { %v1373_v52 = vpop.permute.xlu0 %1372  ;;  %v1385_v61 = vunpack.i.h.bf16 %v1383_v51  ;;  %v1384_v3 = vunpack.i.l.bf16 %v1383_v51 }
  0xac   : > { %v1375_v53 = vunpack.i.h.bf16 %v1373_v52  ;;  %v1374_v54 = vunpack.i.l.bf16 %v1373_v52 }
  0xae   : > { %v385_v58 = vsel %vm384_vm1, %v1600_v7, %v1375_v53  ;;  %v401_v59 = vsel %vm386_vm2, %v400_v57, %v1374_v54  ;;  %v1393_v62 = vpop.permute.xlu1 %1392 }
  0xaf   : > { %v1388_v63 = vpop.permute.xlu0 %1387  ;;  %v387_v1 = vsel %vm386_vm2, %v385_v58, %v1380_v55  ;;  %v402_v2 = vsel %vm388_vm3, %v401_v59, %v1379_v56  ;;  %v1395_v5 = vunpack.i.h.bf16 %v1393_v62  ;;  %v1394_v11 = vunpack.i.l.bf16 %v1393_v62  ;;  %v833_v59 = vld [vmem:[#allocation2] sm:$0xff]  ;;  %v836_v62 = vld [vmem:[#allocation2 + $0x18] sm:$0xff] }
  0xb0   : > { %v1390_v8 = vunpack.i.h.bf16 %v1388_v63  ;;  %v1389_v10 = vunpack.i.l.bf16 %v1388_v63  ;;  %v389_v9 = vsel %vm388_vm3, %v387_v1, %v1370_v60  ;;  %v487_v12 = vrot.slane %v402_v2, 1  ;;  %v834_v60 = vld [vmem:[#allocation2 + $0x8] sm:$0xff]  ;;  %v837_v1 = vld [vmem:[#allocation2 + $0x20] sm:$0xff] }
  0xb1   : > { %v424_v7 = vsel %vm384_vm1, %v1395_v5, %v1385_v61  ;;  %v1316_v61 = vpack.c.bf16 %v834_v60, %v833_v59  ;;  %v838_v2 = vld [vmem:[#allocation2 + $0x28] sm:$0xff]  ;;  %v839_v5 = vld [vmem:[#allocation2 + $0x30] sm:$0xff] }
  0xb2   : > { %v412_v13 = vsel %vm384_vm1, %v1384_v3, %v1389_v10  ;;  %v425_v14 = vsel %vm386_vm2, %v424_v7, %v1390_v8  ;;  %v1403_v16 = vpop.permute.xlu1 %1402  ;;  %v508_v18 = vsel %vm507_vm4, %v389_v9, %v487_v12  ;;  %v1322_v3 = vpack.c.bf16 %v838_v2, %v837_v1  ;;  %v840_v8 = vld [vmem:[#allocation2 + $0x38] sm:$0xff]  ;;  %v842_v9 = vld [vmem:[#allocation2 + $0x48] sm:$0xff]  ;;  %v843_v7 = vld [vmem:[#allocation2 + $0x50] sm:$0xff] }
  0xb3   : > { %v413_v15 = vsel %vm386_vm2, %v412_v13, %v1596_v4  ;;  %v1398_v17 = vpop.permute.xlu0 %1397  ;;  %v1404_v19 = vunpack.i.l.bf16 %v1403_v16  ;;  %1218 = vmatmul.mubr.f32.vlgmr.msra.gmra.mrb[0].mxu0 %v508_v18  ;;  %v426_v23 = vsel %vm388_vm3, %v425_v14, %v1598_v6  ;;  %v1405_v36 = vunpack.i.h.bf16 %v1403_v16  ;;  %1317 = vmatpush3.bf16.msra.mxu1 %v1316_v61  ;;  %v844_v13 = vld [vmem:[#allocation2 + $0x58] sm:$0xff]  ;;  %v846_v16 = vld [vmem:[#allocation2 + $0x68] sm:$0xff]  ;;  %v847_v18 = vld [vmem:[#allocation2 + $0x70] sm:$0xff] }
  0xb4   : > { %v1399_v21 = vunpack.i.l.bf16 %v1398_v17  ;;  %1220 = vmatprep.mubr.msk.f32.mxu0 %vm1490_vm0, %v1491_v20  ;;  %v414_v22 = vsel %vm388_vm3, %v413_v15, %v1394_v11  ;;  %v493_v35 = vrot.slane %v426_v23, 3  ;;  %v1400_v37 = vunpack.i.h.bf16 %v1398_v17  ;;  %1318 = vmatprep.subr.bf16.mxu1 %v1487_v0  ;;  %v841_v11 = vld [vmem:[#allocation2 + $0x40] sm:$0xff] }
  0xb5   : > { %v490_v4 = vrot.slane %v414_v22, 2  ;;  %v1325_v10 = vpack.c.bf16 %v840_v8, %v839_v5  ;;  %v1331_v14 = vpack.c.bf16 %v844_v13, %v843_v7  ;;  %v845_v15 = vld [vmem:[#allocation2 + $0x60] sm:$0xff] }
  0xb6   : > { %v446_v24 = vsel %vm384_vm1, %v1665_v33, %v1399_v21  ;;  %v463_v28 = vpop.permute.xlu1 %462  ;;  %v1334_v17 = vpack.c.bf16 %v846_v16, %v845_v15  ;;  %v1131_v22 = vld [vmem:[%s1898_s4] ss:$0 sm:$0xff] }
  0xb7   : > { %v1408_v29 = vpop.permute.xlu0 %1407  ;;  %v447_v30 = vsel %vm386_vm2, %v446_v24, %v1404_v19  ;;  %v510_v34 = vsel %vm509_vm5, %v487_v12, %v490_v4  ;;  %v512_v43 = vsel %vm511_vm6, %v490_v4, %v493_v35  ;;  %v1328_v12 = vpack.c.bf16 %v842_v9, %v841_v11  ;;  %v848_v19 = vld [vmem:[#allocation2 + $0x78] sm:$0xff] }
  0xb8   : > { %v1410_v31 = vunpack.i.h.bf16 %v1408_v29  ;;  %v1409_v32 = vunpack.i.l.bf16 %v1408_v29  ;;  %1221 = vmatmul.mubr.f32.gmra.mrb[2].mxu0 %v510_v34  ;;  %v1337_v21 = vpack.c.bf16 %v848_v19, %v847_v18 }
  0xb9   : > { %1223 = vmatprep.mubr.msk.f32.mxu0 %vm1490_vm0, %v1491_v20 }
  0xba   : > { %v459_v6 = vsel %vm384_vm1, %v1410_v31, %v1650_v27  ;;  %v448_v38 = vsel %vm388_vm3, %v447_v30, %v1409_v32  ;;  %v1413_v39 = vpop.permute.xlu1 %1412 }
  0xbb   : > { %v460_v33 = vsel %vm386_vm2, %v459_v6, %v1400_v37  ;;  %v466_v40 = vpop.permute.xlu0 %465  ;;  %v1415_v41 = vunpack.i.h.bf16 %v1413_v39  ;;  %v496_v44 = vrot.slane %v448_v38, 4  ;;  %v1414_v45 = vunpack.i.l.bf16 %v1413_v39 }
  0xbc   : > { %v471_v42 = vsel %vm384_vm1, %v463_v28, %v466_v40  ;;  %1224 = vmatmul.mubr.f32.gmra.mrb[4].mxu0 %v512_v43  ;;  %v461_v27 = vsel %vm388_vm3, %v460_v33, %v1405_v36 }
  0xbd   : > { %v472_v46 = vsel %vm386_vm2, %v471_v42, %v1646_v25  ;;  %1226 = vmatprep.mubr.msk.f32.mxu0 %vm1490_vm0, %v1491_v20  ;;  %v514_v50 = vsel %vm513_vm7, %v493_v35, %v496_v44  ;;  %v499_v51 = vrot.slane %v461_v27, 5 }
  0xbe   : > { %v481_v48 = vpop.permute.xlu1 %480  ;;  %v473_v52 = vsel %vm388_vm3, %v472_v46, %v1414_v45 }
  0xbf   : > { %v478_v47 = vpop.permute.xlu0 %477  ;;  %v516_v25 = vsel %vm515_vm8, %v496_v44, %v499_v51  ;;  %v502_v54 = vrot.slane %v473_v52, 6 }
  0xc0   : > { %v483_v49 = vsel %vm384_vm1, %v1415_v41, %v478_v47  ;;  %1227 = vmatmul.mubr.f32.gmra.mrb[6].mxu0 %v514_v50 }
  0xc1   : > { %v484_v53 = vsel %vm386_vm2, %v483_v49, %v481_v48  ;;  %1229 = vmatprep.mubr.msk.f32.mxu0 %vm1490_vm0, %v1491_v20  ;;  %v518_v57 = vsel %vm517_vm9, %v499_v51, %v502_v54 }
  0xc2   : > { %v485_v55 = vsel %vm388_vm3, %v484_v53, %v1648_v26  ;;  %v835_v26 = vld [vmem:[#allocation2 + $0x10] sm:$0xff] }
  0xc3   : > { %v505_v56 = vrot.slane %v485_v55, 7  ;;  %v1319_v63 = vpack.c.bf16 %v836_v62, %v835_v26 }
  0xc4   : > { %1230 = vmatmul.mubr.f32.gmra.mrb[8].mxu0 %v516_v25 }
  0xc5   : > { %1232 = vmatprep.mubr.msk.f32.mxu0 %vm1490_vm0, %v1491_v20  ;;  %v520_v58 = vsel %vm519_vm10, %v502_v54, %v505_v56  ;;  %1320 = vmatpush3.bf16.msra.mxu1 %v1319_v63 }
  0xc6   : > { %1321 = vmatprep.subr.bf16.mxu1 %v1487_v0 }
  0xc8   : > { %1233 = vmatmul.mubr.f32.gmra.mrb[10].mxu0 %v518_v57 }
  0xc9   : > { %1235 = vmatprep.mubr.msk.f32.mxu0 %vm1490_vm0, %v1491_v20  ;;  %1323 = vmatpush3.bf16.msra.mxu1 %v1322_v3 }
  0xca   : > { %1324 = vmatprep.subr.bf16.mxu1 %v1487_v0 }
  0xcc   : > { %1236 = vmatmul.mubr.f32.gmra.mrb[12].mxu0 %v520_v58 }
  0xcd   : > { %1326 = vmatpush3.bf16.msra.mxu1 %v1325_v10 }
  0xce   : > { %1327 = vmatprep.subr.bf16.mxu1 %v1487_v0 }
  0xd1   : > { %1329 = vmatpush3.bf16.msra.mxu1 %v1328_v12 }
  0xd2   : > { %1330 = vmatprep.subr.bf16.mxu1 %v1487_v0 }
  0xd5   : > { %1332 = vmatpush3.bf16.msra.mxu1 %v1331_v14 }
  0xd6   : > { %1333 = vmatprep.subr.bf16.mxu1 %v1487_v0 }
  0xd9   : > { %1335 = vmatpush3.bf16.msra.mxu1 %v1334_v17 }
  0xda   : > { %1336 = vmatprep.subr.bf16.mxu1 %v1487_v0 }
  0xdd   : > { %1338 = vmatpush3.bf16.msra.mxu1 %v1337_v21 }
 0x186   : > { %v610_v23 = vpop.f32.mrb[0].mxu0 }
 0x187   : > { %v1771_v24 = vadd.f32 %v1131_v22, %v610_v23  ;;  %v1219_v4 = vpop.f32.mrb[1].mxu0 }
 0x189   : > { %v644_v28 = vand.u32 2147483647, %v1771_v24  ;;  %vm791_vm11 = vcmp.ge.f32.partialorder %v1771_v24, 0.0 }
 0x18b   : > { %v651_v29 = vmul.f32 0.70710677, %v644_v28  ;;  %v615_v30 = vpop.f32.mrb[2].mxu0 }
 0x18c   : > { %v1774_v31 = vadd.f32 %v1131_v22, %v615_v30  ;;  %v1222_v32 = vpop.f32.mrb[3].mxu0 }
 0x18d   : > { %v658_v34 = vmul.f32 0.3275911, %v651_v29  ;;  %v749_v27 = vmul.f32 %v651_v29, %v651_v29 }
 0x18e   : > { %v645_v35 = vand.u32 2147483647, %v1774_v31  ;;  %vm792_vm12 = vcmp.ge.f32.partialorder %v1774_v31, 0.0 }
 0x18f   : > { %v665_v0 = vadd.f32 1.0, %v658_v34  ;;  %v620_v36 = vpop.f32.mrb[4].mxu0  ;;  %v756_v25 = vsub.f32 0.0, %v749_v27 }
 0x190   : > { %v652_v37 = vmul.f32 0.70710677, %v645_v35  ;;  %v1777_v6 = vadd.f32 %v1131_v22, %v620_v36  ;;  %v1225_v38 = vpop.f32.mrb[5].mxu0 }
 0x191   : > { %1416 = vrcp.f32 %v665_v0  ;;  %v763_v63 = vmul.f32 1.442695, %v756_v25 }
 0x192   : > { %v659_v33 = vmul.f32 0.3275911, %v652_v37  ;;  %v646_v39 = vand.u32 2147483647, %v1777_v6  ;;  %v750_v60 = vmul.f32 %v652_v37, %v652_v37  ;;  %vm793_vm13 = vcmp.ge.f32.partialorder %v1777_v6, 0.0 }
 0x193   : > { %v625_v40 = vpop.f32.mrb[6].mxu0 }
 0x194   : > { %v666_v41 = vadd.f32 1.0, %v659_v33  ;;  %v653_v42 = vmul.f32 0.70710677, %v646_v39  ;;  %v1780_v43 = vadd.f32 %v1131_v22, %v625_v40  ;;  %v1228_v44 = vpop.f32.mrb[7].mxu0  ;;  %v757_v12 = vsub.f32 0.0, %v750_v60 }
 0x196   : > { %1418 = vrcp.f32 %v666_v41  ;;  %v660_v45 = vmul.f32 0.3275911, %v653_v42  ;;  %v647_v46 = vand.u32 2147483647, %v1780_v43  ;;  %v751_v5 = vmul.f32 %v653_v42, %v653_v42 }
 0x197   : > { %v630_v47 = vpop.f32.mrb[8].mxu0  ;;  %vm794_vm14 = vcmp.ge.f32.partialorder %v1780_v43, 0.0 }
 0x198   : > { %v667_v48 = vadd.f32 1.0, %v660_v45  ;;  %v1783_v49 = vadd.f32 %v1131_v22, %v630_v47  ;;  %v1231_v50 = vpop.f32.mrb[9].mxu0  ;;  %v654_v51 = vmul.f32 0.70710677, %v647_v46  ;;  %v758_v19 = vsub.f32 0.0, %v751_v5 }
 0x19a   : > { %1420 = vrcp.f32 %v667_v48  ;;  %v648_v52 = vand.u32 2147483647, %v1783_v49  ;;  %v661_v54 = vmul.f32 0.3275911, %v654_v51  ;;  %v752_v14 = vmul.f32 %v654_v51, %v654_v51 }
 0x19b   : > { %v1786_v53 = vpop.eup %1416  ;;  %v635_v55 = vpop.f32.mrb[10].mxu0  ;;  %v767_v37 = vmul.f32 1.442695, %v758_v19  ;;  %vm795_vm15 = vcmp.ge.f32.partialorder %v1783_v49, 0.0 }
 0x19c   : > { %v655_v56 = vmul.f32 0.70710677, %v648_v52  ;;  %v1788_v57 = vadd.f32 %v1131_v22, %v635_v55  ;;  %v1234_v58 = vpop.f32.mrb[11].mxu0  ;;  %v686_v59 = vmul.f32 1.0614054, %v1786_v53  ;;  %v668_v61 = vadd.f32 1.0, %v661_v54 }
 0x19d   : > { %v759_v30 = vsub.f32 0.0, %v752_v14 }
 0x19e   : > { %v662_v26 = vmul.f32 0.3275911, %v655_v56  ;;  %v649_v62 = vand.u32 2147483647, %v1788_v57  ;;  %1422 = vrcp.f32 %v668_v61  ;;  %v693_v2 = vadd.f32 -1.4531521, %v686_v59 }
 0x19f   : > { %v640_v1 = vpop.f32.mrb[12].mxu0  ;;  %v753_v34 = vmul.f32 %v655_v56, %v655_v56  ;;  %v769_v42 = vmul.f32 1.442695, %v759_v30  ;;  %vm796_vm1 = vcmp.ge.f32.partialorder %v1788_v57, 0.0 }
 0x1a0   : > { %v1792_v3 = vpop.eup %1418  ;;  %v669_v8 = vadd.f32 1.0, %v662_v26  ;;  %v656_v10 = vmul.f32 0.70710677, %v649_v62  ;;  %v1794_v11 = vadd.f32 %v1131_v22, %v640_v1  ;;  %v1237_v9 = vpop.f32.mrb[13].mxu0  ;;  %v700_v7 = vmul.f32 %v1786_v53, %v693_v2 }
 0x1a1   : > { %v687_v13 = vmul.f32 1.0614054, %v1792_v3  ;;  %v765_v22 = vmul.f32 1.442695, %v757_v12  ;;  %v760_v27 = vsub.f32 0.0, %v753_v34 }
 0x1a2   : > { %1424 = vrcp.f32 %v669_v8  ;;  %v663_v15 = vmul.f32 0.3275911, %v656_v10  ;;  %v650_v16 = vand.u32 2147483647, %v1794_v11  ;;  %v707_v17 = vadd.f32 1.4214138, %v700_v7 }
 0x1a3   : > { %1426 = vpow2.f32 %v763_v63  ;;  %v694_v23 = vadd.f32 -1.4531521, %v687_v13  ;;  %v754_v50 = vmul.f32 %v656_v10, %v656_v10  ;;  %v771_v60 = vmul.f32 1.442695, %v760_v27 }
 0x1a4   : > { %v1799_v18 = vpop.eup %1420  ;;  %v670_v21 = vadd.f32 1.0, %v663_v15  ;;  %v657_v4 = vmul.f32 0.70710677, %v650_v16  ;;  %v714_v28 = vmul.f32 %v1786_v53, %v707_v17  ;;  %v812_v7 = vmul.f32 0.5, %v1771_v24 }
 0x1a5   : > { %v688_v29 = vmul.f32 1.0614054, %v1799_v18  ;;  %v701_v32 = vmul.f32 %v1792_v3, %v694_v23  ;;  %v761_v1 = vsub.f32 0.0, %v754_v50  ;;  %vm797_vm2 = vcmp.ge.f32.partialorder %v1794_v11, 0.0 }
 0x1a6   : > { %1428 = vrcp.f32 %v670_v21  ;;  %v664_v35 = vmul.f32 0.3275911, %v657_v4  ;;  %v721_v0 = vadd.f32 -0.28449672, %v714_v28 }
 0x1a7   : > { %v695_v36 = vadd.f32 -1.4531521, %v688_v29  ;;  %v708_v38 = vadd.f32 1.4214138, %v701_v32  ;;  %1430 = vpow2.f32 %v765_v22  ;;  %v773_v21 = vmul.f32 1.442695, %v761_v1 }
 0x1a8   : > { %v1804_v33 = vpop.eup %1422  ;;  %v671_v39 = vadd.f32 1.0, %v664_v35  ;;  %v728_v40 = vmul.f32 %v1786_v53, %v721_v0 }
 0x1a9   : > { %v702_v41 = vmul.f32 %v1799_v18, %v695_v36  ;;  %v715_v44 = vmul.f32 %v1792_v3, %v708_v38  ;;  %v689_v45 = vmul.f32 1.0614054, %v1804_v33  ;;  %v813_v38 = vmul.f32 0.5, %v1774_v31 }
 0x1aa   : > { %1432 = vrcp.f32 %v671_v39  ;;  %v735_v46 = vadd.f32 0.2548296, %v728_v40 }
 0x1ab   : > { %v709_v47 = vadd.f32 1.4214138, %v702_v41  ;;  %1434 = vpow2.f32 %v767_v37  ;;  %v722_v51 = vadd.f32 -0.28449672, %v715_v44  ;;  %v696_v52 = vadd.f32 -1.4531521, %v689_v45 }
 0x1ac   : > { %v1810_v48 = vpop.eup %1424  ;;  %v742_v25 = vmul.f32 %v1786_v53, %v735_v46  ;;  %1436 = vpow2.f32 %v769_v42  ;;  %v755_v53 = vmul.f32 %v657_v4, %v657_v4 }
 0x1ad   : > { %v716_v54 = vmul.f32 %v1799_v18, %v709_v47  ;;  %v690_v55 = vmul.f32 1.0614054, %v1810_v48  ;;  %v1427_v56 = vpop.eup %1426  ;;  %v729_v58 = vmul.f32 %v1792_v3, %v722_v51  ;;  %v703_v59 = vmul.f32 %v1804_v33, %v696_v52 }
 0x1ae   : > { %v777_v61 = vmul.f32 %v1427_v56, %v742_v25  ;;  %1438 = vpow2.f32 %v771_v60  ;;  %v762_v29 = vsub.f32 0.0, %v755_v53 }
 0x1af   : > { %v723_v26 = vadd.f32 -0.28449672, %v716_v54  ;;  %v697_v62 = vadd.f32 -1.4531521, %v690_v55  ;;  %v736_v2 = vadd.f32 0.2548296, %v729_v58  ;;  %1440 = vpow2.f32 %v773_v21 }
 0x1b0   : > { %v1818_v63 = vpop.eup %1428  ;;  %v710_v5 = vadd.f32 1.4214138, %v703_v59  ;;  %v784_v8 = vsub.f32 1.0, %v777_v61  ;;  %v775_v50 = vmul.f32 1.442695, %v762_v29  ;;  %v814_v59 = vmul.f32 0.5, %v1777_v6 }
 0x1b1   : > { %v730_v10 = vmul.f32 %v1799_v18, %v723_v26  ;;  %v704_v9 = vmul.f32 %v1810_v48, %v697_v62  ;;  %v691_v12 = vmul.f32 1.0614054, %v1818_v63  ;;  %v743_v13 = vmul.f32 %v1792_v3, %v736_v2  ;;  %v1431_v15 = vpop.eup %1430 }
 0x1b2   : > { %v717_v14 = vmul.f32 %v1804_v33, %v710_v5  ;;  %v798_v16 = vsub.f32 0.0, %v784_v8  ;;  %1442 = vpow2.f32 %v775_v50 }
 0x1b3   : > { %v737_v17 = vadd.f32 0.2548296, %v730_v10  ;;  %v711_v19 = vadd.f32 1.4214138, %v704_v9  ;;  %v778_v23 = vmul.f32 %v1431_v15, %v743_v13  ;;  %v698_v4 = vadd.f32 -1.4531521, %v691_v12 }
 0x1b4   : > { %v724_v22 = vadd.f32 -0.28449672, %v717_v14  ;;  %v1827_v28 = vpop.eup %1432  ;;  %v805_v30 = vsel %vm791_vm11, %v784_v8, %v798_v16  ;;  %v815_v16 = vmul.f32 0.5, %v1780_v43 }
 0x1b5   : > { %v744_v32 = vmul.f32 %v1799_v18, %v737_v17  ;;  %v718_v3 = vmul.f32 %v1810_v48, %v711_v19  ;;  %v1435_v34 = vpop.eup %1434  ;;  %v819_v35 = vadd.f32 1.0, %v805_v30  ;;  %v785_v0 = vsub.f32 1.0, %v778_v23 }
 0x1b6   : > { %v731_v36 = vmul.f32 %v1804_v33, %v724_v22  ;;  %v705_v37 = vmul.f32 %v1818_v63, %v698_v4  ;;  %v692_v41 = vmul.f32 1.0614054, %v1827_v28  ;;  %v1437_v42 = vpop.eup %1436  ;;  %v816_v30 = vmul.f32 0.5, %v1783_v49 }
 0x1b7   : > { %v779_v39 = vmul.f32 %v1435_v34, %v744_v32  ;;  %v725_v40 = vadd.f32 -0.28449672, %v718_v3  ;;  %v826_v24 = vmul.f32 %v819_v35, %v812_v7  ;;  %v799_v44 = vsub.f32 0.0, %v785_v0 }
 0x1b8   : > { %v738_v45 = vadd.f32 0.2548296, %v731_v36  ;;  %v712_v18 = vadd.f32 1.4214138, %v705_v37  ;;  %v699_v47 = vadd.f32 -1.4531521, %v692_v41  ;;  %v1439_v31 = vpop.eup %1438 }
 0x1b9   : > { %v786_v27 = vsub.f32 1.0, %v779_v39  ;;  %v732_v46 = vmul.f32 %v1810_v48, %v725_v40  ;;  %1271 = vmatmul.mubr.f32.vlgmr.msra.gmra.mrb[0].mxu1 %v826_v24  ;;  %v806_v51 = vsel %vm792_vm12, %v785_v0, %v799_v44  ;;  %v1441_v15 = vpop.eup %1440  ;;  %v817_v37 = vmul.f32 0.5, %v1788_v57  ;;  %v1132_v24 = vld [vmem:[%s1900_s6] ss:$0 sm:$0xff] }
 0x1ba   : > { %v745_v52 = vmul.f32 %v1804_v33, %v738_v45  ;;  %v719_v25 = vmul.f32 %v1818_v63, %v712_v18  ;;  %1273 = vmatprep.mubr.msk.f32.mxu1 %vm1490_vm0, %v1491_v20  ;;  %v820_v54 = vadd.f32 1.0, %v806_v51  ;;  %v706_v58 = vmul.f32 %v1827_v28, %v699_v47 }
 0x1bb   : > { %v800_v55 = vsub.f32 0.0, %v786_v27  ;;  %v739_v56 = vadd.f32 0.2548296, %v732_v46  ;;  %v818_v41 = vmul.f32 0.5, %v1794_v11 }
 0x1bc   : > { %v780_v60 = vmul.f32 %v1437_v42, %v745_v52  ;;  %v726_v61 = vadd.f32 -0.28449672, %v719_v25  ;;  %v827_v26 = vmul.f32 %v820_v54, %v813_v38  ;;  %v713_v1 = vadd.f32 1.4214138, %v706_v58  ;;  %v1443_v3 = vpop.eup %1442 }
 0x1bd   : > { %v807_v62 = vsel %vm793_vm13, %v786_v27, %v800_v55  ;;  %v746_v33 = vmul.f32 %v1810_v48, %v739_v56 }
 0x1be   : > { %v821_v53 = vadd.f32 1.0, %v807_v62  ;;  %v787_v2 = vsub.f32 1.0, %v780_v60  ;;  %v733_v5 = vmul.f32 %v1818_v63, %v726_v61  ;;  %1274 = vmatmul.mubr.f32.gmra.mrb[2].mxu1 %v827_v26  ;;  %v720_v10 = vmul.f32 %v1827_v28, %v713_v1 }
 0x1bf   : > { %v781_v8 = vmul.f32 %v1439_v31, %v746_v33  ;;  %1276 = vmatprep.mubr.msk.f32.mxu1 %vm1490_vm0, %v1491_v20 }
 0x1c0   : > { %v828_v6 = vmul.f32 %v821_v53, %v814_v59  ;;  %v801_v9 = vsub.f32 0.0, %v787_v2  ;;  %v740_v12 = vadd.f32 0.2548296, %v733_v5  ;;  %v727_v48 = vadd.f32 -0.28449672, %v720_v10 }
 0x1c1   : > { %v788_v7 = vsub.f32 1.0, %v781_v8 }
 0x1c2   : > { %v808_v13 = vsel %vm794_vm14, %v787_v2, %v801_v9  ;;  %v747_v14 = vmul.f32 %v1818_v63, %v740_v12  ;;  %1277 = vmatmul.mubr.f32.gmra.mrb[4].mxu1 %v828_v6  ;;  %v734_v21 = vmul.f32 %v1827_v28, %v727_v48 }
 0x1c3   : > { %v822_v17 = vadd.f32 1.0, %v808_v13  ;;  %v802_v19 = vsub.f32 0.0, %v788_v7  ;;  %1279 = vmatprep.mubr.msk.f32.mxu1 %vm1490_vm0, %v1491_v20 }
 0x1c4   : > { %v782_v23 = vmul.f32 %v1441_v15, %v747_v14  ;;  %v741_v29 = vadd.f32 0.2548296, %v734_v21 }
 0x1c5   : > { %v829_v22 = vmul.f32 %v822_v17, %v815_v16  ;;  %v809_v4 = vsel %vm795_vm15, %v788_v7, %v802_v19 }
 0x1c6   : > { %v823_v63 = vadd.f32 1.0, %v809_v4  ;;  %v789_v32 = vsub.f32 1.0, %v782_v23  ;;  %v748_v43 = vmul.f32 %v1827_v28, %v741_v29 }
 0x1c7   : > { %1280 = vmatmul.mubr.f32.gmra.mrb[6].mxu1 %v829_v22 }
 0x1c8   : > { %1282 = vmatprep.mubr.msk.f32.mxu1 %vm1490_vm0, %v1491_v20  ;;  %v830_v34 = vmul.f32 %v823_v63, %v816_v30  ;;  %v803_v35 = vsub.f32 0.0, %v789_v32  ;;  %v783_v0 = vmul.f32 %v1443_v3, %v748_v43 }
 0x1ca   : > { %v810_v36 = vsel %vm796_vm1, %v789_v32, %v803_v35  ;;  %v790_v38 = vsub.f32 1.0, %v783_v0 }
 0x1cb   : > { %1283 = vmatmul.mubr.f32.gmra.mrb[8].mxu1 %v830_v34  ;;  %v824_v49 = vadd.f32 1.0, %v810_v36 }
 0x1cc   : > { %1285 = vmatprep.mubr.msk.f32.mxu1 %vm1490_vm0, %v1491_v20  ;;  %v804_v39 = vsub.f32 0.0, %v790_v38 }
 0x1cd   : > { %v831_v28 = vmul.f32 %v824_v49, %v817_v37 }
 0x1ce   : > { %v811_v40 = vsel %vm797_vm2, %v790_v38, %v804_v39 }
 0x1cf   : > { %1286 = vmatmul.mubr.f32.gmra.mrb[10].mxu1 %v831_v28  ;;  %v825_v42 = vadd.f32 1.0, %v811_v40 }
 0x1d0   : > { %1288 = vmatprep.mubr.msk.f32.mxu1 %vm1490_vm0, %v1491_v20 }
 0x1d1   : > { %v832_v57 = vmul.f32 %v825_v42, %v818_v41 }
 0x1d3   : > { %1289 = vmatmul.mubr.f32.gmra.mrb[12].mxu1 %v832_v57 }
 0x28c   : > { %v922_v44 = vpop.f32.mrb[0].mxu1 }
 0x28d   : > { %v923_v45 = vadd.f32 %v1132_v24, %v922_v44  ;;  %v1272_v18 = vpop.f32.mrb[1].mxu1 }
 0x28f   : > { %956 = vst [vmem:[%s348_s14] sm:$0x7f] %v923_v45  ;;  %v966_v46 = vrot.slane %v923_v45, 7 }
 0x291   : > { %v927_v11 = vpop.f32.mrb[2].mxu1 }
 0x292   : > { %v928_v27 = vadd.f32 %v1132_v24, %v927_v11  ;;  %v1275_v20 = vpop.f32.mrb[3].mxu1 }
 0x294   : > { %v967_v47 = vrot.slane %v928_v27, 7  ;;  %v978_v54 = vrot.slane %v928_v27, 6 }
 0x295   : > { %v932_v50 = vpop.f32.mrb[4].mxu1 }
 0x296   : > { %v968_v51 = vsel %vm519_vm10, %v966_v46, %v967_v47  ;;  %v933_v52 = vadd.f32 %v1132_v24, %v932_v50  ;;  %v1278_v25 = vpop.f32.mrb[5].mxu1 }
 0x297   : > { %970 = vst [vmem:[%s348_s14 + $0x8] sm:$0x7f] %v968_v51 }
 0x298   : > { %v979_v55 = vrot.slane %v933_v52, 6  ;;  %v989_v61 = vrot.slane %v933_v52, 5 }
 0x29a   : > { %v937_v56 = vpop.f32.mrb[6].mxu1  ;;  %v980_v58 = vsel %vm517_vm9, %v978_v54, %v979_v55 }
 0x29b   : > { %v938_v59 = vadd.f32 %v1132_v24, %v937_v56  ;;  %v1281_v60 = vpop.f32.mrb[7].mxu1  ;;  %982 = vst [vmem:[%s348_s14 + $0x10] sm:$0x7f] %v980_v58 }
 0x29d   : > { %v990_v31 = vrot.slane %v938_v59, 5  ;;  %v959_v53 = vrot.slane %v938_v59, 4 }
 0x29e   : > { %v942_v26 = vpop.f32.mrb[8].mxu1 }
 0x29f   : > { %v991_v62 = vsel %vm515_vm8, %v989_v61, %v990_v31  ;;  %v943_v33 = vadd.f32 %v1132_v24, %v942_v26  ;;  %v1284_v1 = vpop.f32.mrb[9].mxu1 }
 0x2a0   : > { %993 = vst [vmem:[%s348_s14 + $0x18] sm:$0x7f] %v991_v62 }
 0x2a1   : > { %v960_v2 = vrot.slane %v943_v33, 4  ;;  %v972_v9 = vrot.slane %v943_v33, 3 }
 0x2a2   : > { %v947_v5 = vpop.f32.mrb[10].mxu1 }
 0x2a3   : > { %v961_v8 = vsel %vm513_vm7, %v959_v53, %v960_v2  ;;  %v948_v10 = vadd.f32 %v1132_v24, %v947_v5  ;;  %v1287_v6 = vpop.f32.mrb[11].mxu1 }
 0x2a4   : > { %963 = vst [vmem:[%s353_s19] sm:$0x7f] %v961_v8 }
 0x2a5   : > { %v973_v12 = vrot.slane %v948_v10, 3  ;;  %v984_v15 = vrot.slane %v948_v10, 2 }
 0x2a6   : > { %v952_v48 = vpop.f32.mrb[12].mxu1 }
 0x2a7   : > { %v974_v7 = vsel %vm511_vm6, %v972_v9, %v973_v12  ;;  %v953_v13 = vadd.f32 %v1132_v24, %v952_v48  ;;  %v1290_v14 = vpop.f32.mrb[13].mxu1 }
 0x2a8   : > { %976 = vst [vmem:[%s353_s19 + $0x8] sm:$0x7f] %v974_v7 }
 0x2a9   : > { %v985_v16 = vrot.slane %v953_v13, 2  ;;  %v994_v17 = vrot.slane %v953_v13, 1 }
 0x2ab   : > { %v986_v19 = vsel %vm509_vm5, %v984_v15, %v985_v16  ;;  %996 = vst [vmem:[%s353_s19 + $0x18] sm:$0x7f] %v994_v17 }
 0x2ac   : > { %988 = vst [vmem:[%s353_s19 + $0x10] sm:$0x7f] %v986_v19 }
 0x2ad PF: > { %s20_s27 = sadd.s32 1, %s1482_s27  }
 0x2ae   : > { %p17_p3 = scmp.ge.s32.totalorder %s20_s27, 4  }
 0x2b0   :  { %19 = sbr.rel (!%p17_p3) target bundleno = 1 (0x1), region = 104 }
 0x2b7   :  { %1034 = vsyncpa [#allocation3], 1 }
 0x2b8   :  { %1036 = vsyncpa [#allocation3 + $0x1], 1 }

</bundles_post_ra>
